<compile_context>
chip_gen: v7x
topology: tpu7x:2x2x1
jax: 0.10.0
libtpu: 0.0.40
codegen_flags: <defaults>
</compile_context>

<pallas_src>
import jax
import jax.numpy as jnp
from jax.experimental import pallas as pl
from jax.experimental.pallas import tpu as pltpu


_FUSION_VMEM_BUDGET = 28 * 1024 * 1024   # gate for the fused path
_FUSED_VMEM_LIMIT = 32 * 1024 * 1024     # scoped VMEM limit for the fused call
_TILE_TARGET_BYTES = 3 * 1024 * 1024     # ~3 MiB HW tiles in the fallback path


# ---------------------------------------------------------------------------
# Fused path: pool + FC + hsigmoid + scale in one pass over x (grid = (B,))
# ---------------------------------------------------------------------------
def _make_fused_kernel(inv_hw: float):
    def kernel(x_ref, wt_ref, b_ref, o_ref):
        # Global average pool over H*W (f32 accumulation).
        pooled = jnp.sum(x_ref[...].astype(jnp.float32), axis=-1) * inv_hw   # (1, C)
        # 1x1 conv == (1, C_in) @ (C_in, C_out) + bias.
        y = jnp.dot(pooled, wt_ref[...].astype(jnp.float32),
                    preferred_element_type=jnp.float32)
        y = y + b_ref[...].astype(jnp.float32)                               # (1, C)
        g = jnp.clip(y + 3.0, 0.0, 6.0) * (1.0 / 6.0)                        # hsigmoid
        # Broadcast multiply in the input's native dtype (gate is in [0, 1]).
        o_ref[...] = x_ref[...] * g[:, :, None].astype(o_ref.dtype)
    return kernel


def _ese_fused(x3, wt, b2, B, C, HW, itemsize, w_item):
    flops = B * (2 * C * HW + 2 * C * C)
    bytes_accessed = 2 * B * C * HW * itemsize + C * C * w_item + C * w_item
    # TODO(synk): v7x B=1 inference — split the HW reduction across the two
    # TensorCores (core-parallel leading axis + per-core partial accumulators).
    return pl.pallas_call(
        _make_fused_kernel(1.0 / float(HW)),
        out_shape=jax.ShapeDtypeStruct((B, C, HW), x3.dtype),
        grid_spec=pltpu.PrefetchScalarGridSpec(
            num_scalar_prefetch=0,
            grid=(B,),
            in_specs=[
                pl.BlockSpec((1, C, HW), lambda b: (b, 0, 0)),
                # The weight's block index never changes; pl.Buffered(1) could
                # halve its resident footprint (kept default for robustness,
                # the 2x weight is already accounted for in the fusion gate).
                pl.BlockSpec((C, C), lambda b: (0, 0)),
                pl.BlockSpec((1, C), lambda b: (0, 0)),
            ],
            out_specs=pl.BlockSpec((1, C, HW), lambda b: (b, 0, 0)),
        ),
        compiler_params=pltpu.CompilerParams(
            dimension_semantics=("parallel",),
            vmem_limit_bytes=_FUSED_VMEM_LIMIT),
        cost_estimate=pl.CostEstimate(flops=flops, transcendentals=0,
                                      bytes_accessed=bytes_accessed),
    )(x3, wt, b2)


# ---------------------------------------------------------------------------
# Fallback pass A: global average pool -> pooled (B, 1, C) f32
# ---------------------------------------------------------------------------
def _make_pool_kernel(hw: int, hw_tile: int):
    inv_hw = 1.0 / float(hw)
    needs_mask = (hw % hw_tile) != 0
    lane_chunks = hw_tile // 128 if (hw_tile % 128 == 0) else 0

    def kernel(x_ref, pooled_ref, acc_ref):
        t = pl.program_id(1)

        @pl.when(t == 0)
        def _init():
            acc_ref[...] = jnp.zeros_like(acc_ref)

        x = x_ref[...].astype(jnp.float32)                       # (1, C, hw_tile)
        if needs_mask:
            # Tail tile: columns beyond HW are padding -> contribute 0.
            col = jax.lax.broadcasted_iota(jnp.int32, x.shape, 2) + t * hw_tile
            x = jnp.where(col < hw, x, 0.0)

        if lane_chunks:
            # Lane-shaped partial accumulation: pure VPU adds per step; the
            # single cross-lane reduce is deferred to the finish block.
            partial = x[:, :, 0:128]
            for j in range(1, lane_chunks):
                partial = partial + x[:, :, j * 128:(j + 1) * 128]
            acc_ref[...] += partial                              # (1, C, 128)
        else:
            acc_ref[...] += jnp.sum(x, axis=-1, keepdims=True)   # (1, C, 1)

        @pl.when(t == pl.num_programs(1) - 1)
        def _finish():
            pooled = jnp.sum(acc_ref[...], axis=-1) * inv_hw     # (1, C)
            pooled_ref[...] = pooled[:, None, :]                 # (1, 1, C) lane-dense

    return kernel


# ---------------------------------------------------------------------------
# Fallback pass B: one-shot FC (1x1 conv) + hsigmoid over all batches
# ---------------------------------------------------------------------------
def _fc_hsig_kernel(pooled_ref, wt_ref, b_ref, gate_ref):
    p = pooled_ref[...][:, 0, :]                                 # (B, C) f32
    y = jnp.dot(p, wt_ref[...].astype(jnp.float32),
                preferred_element_type=jnp.float32)
    y = y + b_ref[...].astype(jnp.float32)
    g = jnp.clip(y + 3.0, 0.0, 6.0) * (1.0 / 6.0)                # (B, C)
    # (B, C, 1) layout: one-shot relayout/store of B*C values here buys a
    # relayout-free lane broadcast in the streaming scale pass.
    gate_ref[...] = g[:, :, None]


# ---------------------------------------------------------------------------
# Fallback pass C: out = x * gate (streaming, native dtype)
# ---------------------------------------------------------------------------
def _scale_kernel(x_ref, gate_ref, o_ref):
    o_ref[...] = x_ref[...] * gate_ref[...].astype(o_ref.dtype)


def _pick_hw_tile(hw, c, itemsize, max_hw_tile=None):
    cols = max(128, (_TILE_TARGET_BYTES // max(1, c * itemsize)) // 128 * 128)
    if max_hw_tile is not None:
        cols = max(128, min(cols, (max_hw_tile // 128) * 128))
    if hw <= cols:
        return hw           # full-extent block (always layout-legal), T == 1
    return cols             # 128-multiple tile; tail block masked in pass A


def _ese_streaming(x3, wt, b2, B, C, HW, itemsize, w_item, max_hw_tile):
    hw_tile = _pick_hw_tile(HW, C, itemsize, max_hw_tile)
    T = pl.cdiv(HW, hw_tile)
    acc_cols = 128 if (hw_tile % 128 == 0) else 1

    pooled = pl.pallas_call(
        _make_pool_kernel(HW, hw_tile),
        out_shape=jax.ShapeDtypeStruct((B, 1, C), jnp.float32),
        grid_spec=pltpu.PrefetchScalarGridSpec(
            num_scalar_prefetch=0,
            grid=(B, T),
            in_specs=[pl.BlockSpec((1, C, hw_tile), lambda b, t: (b, 0, t))],
            out_specs=pl.BlockSpec((1, 1, C), lambda b, t: (b, 0, 0)),
            scratch_shapes=[pltpu.VMEM((1, C, acc_cols), jnp.float32)],
        ),
        compiler_params=pltpu.CompilerParams(
            dimension_semantics=("parallel", "arbitrary")),
        cost_estimate=pl.CostEstimate(
            flops=B * C * HW, transcendentals=0,
            bytes_accessed=B * C * HW * itemsize + B * C * 4),
    )(x3)

    gate = pl.pallas_call(
        _fc_hsig_kernel,
        out_shape=jax.ShapeDtypeStruct((B, C, 1), jnp.float32),
        grid_spec=pltpu.PrefetchScalarGridSpec(
            num_scalar_prefetch=0,
            grid=(1,),
            in_specs=[
                pl.BlockSpec((B, 1, C), lambda i: (0, 0, 0)),
                pl.BlockSpec((C, C), lambda i: (0, 0)),
                pl.BlockSpec((1, C), lambda i: (0, 0)),
            ],
            out_specs=pl.BlockSpec((B, C, 1), lambda i: (0, 0, 0)),
        ),
        compiler_params=pltpu.CompilerParams(
            dimension_semantics=("arbitrary",)),
        cost_estimate=pl.CostEstimate(
            flops=2 * B * C * C, transcendentals=0,
            bytes_accessed=B * C * 8 + C * C * w_item),
    )(pooled, wt, b2)

    out = pl.pallas_call(
        _scale_kernel,
        out_shape=jax.ShapeDtypeStruct((B, C, HW), x3.dtype),
        grid_spec=pltpu.PrefetchScalarGridSpec(
            num_scalar_prefetch=0,
            grid=(B, T),
            in_specs=[
                pl.BlockSpec((1, C, hw_tile), lambda b, t: (b, 0, t)),
                pl.BlockSpec((1, C, 1), lambda b, t: (b, 0, 0)),
            ],
            out_specs=pl.BlockSpec((1, C, hw_tile), lambda b, t: (b, 0, t)),
        ),
        compiler_params=pltpu.CompilerParams(
            dimension_semantics=("parallel", "parallel")),
        cost_estimate=pl.CostEstimate(
            flops=B * C * HW, transcendentals=0,
            bytes_accessed=2 * B * C * HW * itemsize + B * C * 4),
    )(x3, gate)
    return out


# ---------------------------------------------------------------------------
# Wrapper
# ---------------------------------------------------------------------------
def ese_forward(x, fc_weight, fc_bias, *, force_two_pass=False, max_hw_tile=None):
    """eSEModule forward. x: (B, C, H, W); fc_weight: (C, C, 1, 1); fc_bias: (C,)."""
    B, C, H, W = x.shape
    HW = H * W
    itemsize = jnp.dtype(x.dtype).itemsize
    w_item = jnp.dtype(fc_weight.dtype).itemsize

    x3 = x.reshape(B, C, HW)
    wt = fc_weight.reshape(C, C).T            # (C_in, C_out) so that pooled @ wt
    b2 = fc_bias.reshape(1, C)

    # Fused-path footprint: double-buffered input + output slabs + double-
    # buffered weight + bias.
    fused_bytes = 4 * C * HW * itemsize + 2 * C * C * w_item + 2 * C * w_item

    if (not force_two_pass) and fused_bytes <= _FUSION_VMEM_BUDGET:
        out = _ese_fused(x3, wt, b2, B, C, HW, itemsize, w_item)
    else:
        out = _ese_streaming(x3, wt, b2, B, C, HW, itemsize, w_item, max_hw_tile)
    return out.reshape(B, C, H, W)


if __name__ == "__main__":
    key = jax.random.PRNGKey(0)
    k_x, k_w, k_b, k_x2 = jax.random.split(key, 4)

    def reference(x, w, b):
        Bc, Cc, Hc, Wc = x.shape
        pooled = jnp.mean(x.astype(jnp.float32), axis=(2, 3))
        y = pooled @ w.reshape(Cc, Cc).T.astype(jnp.float32) + b.astype(jnp.float32)
        gate = jnp.clip(y + 3.0, 0.0, 6.0) / 6.0
        return (x.astype(jnp.float32) * gate[:, :, None, None]).astype(x.dtype)

    # Case 1: fused single-pass path (the common case).
    B, C, H, W = 2, 4, 16, 16
    x = jax.random.normal(k_x, (B, C, H, W), dtype=jnp.float32) * 2.0
    fc_w = jax.random.normal(k_w, (C, C, 1, 1), dtype=jnp.float32) * 0.5
    fc_b = jax.random.normal(k_b, (C,), dtype=jnp.float32) * 0.1
    y1 = jax.block_until_ready(ese_forward(x, fc_w, fc_b))
    assert y1.shape == x.shape and y1.dtype == x.dtype
    assert jnp.allclose(y1, reference(x, fc_w, fc_b), atol=1e-5, rtol=1e-5), \
        "fused path mismatch vs reference"

    # Case 2: large-slab streaming fallback (forced), with a masked tail tile
    # (HW = 144, hw_tile = 128 -> T = 2, 16 padded columns masked to zero).
    B2, C2, H2, W2 = 2, 8, 12, 12
    x2 = jax.random.normal(k_x2, (B2, C2, H2, W2), dtype=jnp.float32)
    fc_w2 = jax.random.normal(k_w, (C2, C2, 1, 1), dtype=jnp.float32) * 0.5
    fc_b2 = jax.random.normal(k_b, (C2,), dtype=jnp.float32) * 0.1
    y2 = jax.block_until_ready(
        ese_forward(x2, fc_w2, fc_b2, force_two_pass=True, max_hw_tile=128))
    assert y2.shape == x2.shape and y2.dtype == x2.dtype
    assert jnp.allclose(y2, reference(x2, fc_w2, fc_b2), atol=1e-5, rtol=1e-5), \
        "streaming fallback mismatch vs reference"

    print("KERNEL_OK")
</pallas_src>

<mosaic_0001>
module attributes {stable_mosaic.version = 11 : i64} {
  func.func @kernel(%arg0: i32, %arg1: memref<1x4x256xf32, #tpu.memory_space<vmem>>, %arg2: memref<4x4xf32, #tpu.memory_space<vmem>>, %arg3: memref<1x4xf32, #tpu.memory_space<vmem>>, %arg4: memref<1x4x256xf32, #tpu.memory_space<vmem>>) attributes {dimension_semantics = [#tpu.dimension_semantics<parallel>], iteration_bounds = array<i64: 2>, scalar_prefetch = 0 : i64, scratch_operands = 0 : i64, tpu.core_type = #tpu.core_type<tc>, window_params = [{transform_indices = @transform_0, window_bounds = array<i64: 1, 4, 256>}, {pipeline_mode = #tpu.pipeline_mode<synchronous>, transform_indices = @transform_1, window_bounds = array<i64: 4, 4>}, {pipeline_mode = #tpu.pipeline_mode<synchronous>, transform_indices = @transform_2, window_bounds = array<i64: 1, 4>}, {transform_indices = @transform_3, window_bounds = array<i64: 1, 4, 256>}]} {
    %c0 = arith.constant 0 : index
    %c0_0 = arith.constant 0 : index
    %c0_1 = arith.constant 0 : index
    %0 = vector.load %arg1[%c0, %c0_0, %c0_1] : memref<1x4x256xf32, #tpu.memory_space<vmem>>, vector<1x4x256xf32>
    %cst = arith.constant dense<0.000000e+00> : vector<1x4xf32>
    %1 = vector.multi_reduction <add>, %0, %cst [2] : vector<1x4x256xf32> to vector<1x4xf32>
    %cst_2 = arith.constant 3.906250e-03 : f32
    %2 = vector.broadcast %cst_2 : f32 to vector<1x4xf32>
    %3 = arith.mulf %1, %2 : vector<1x4xf32>
    %c0_3 = arith.constant 0 : index
    %c0_4 = arith.constant 0 : index
    %4 = vector.load %arg2[%c0_3, %c0_4] : memref<4x4xf32, #tpu.memory_space<vmem>>, vector<4x4xf32>
    %cst_5 = arith.constant dense<0.000000e+00> : vector<1x4xf32>
    %5 = tpu.matmul %3, %4, %cst_5 {dimension_numbers = #tpu.dot_dimension_numbers<[1], [0], [0], [1], [0, 0, 1, 1], [], []>} : vector<1x4xf32>, vector<4x4xf32>, vector<1x4xf32> -> vector<1x4xf32>
    %c0_6 = arith.constant 0 : index
    %c0_7 = arith.constant 0 : index
    %6 = vector.load %arg3[%c0_6, %c0_7] : memref<1x4xf32, #tpu.memory_space<vmem>>, vector<1x4xf32>
    %7 = arith.addf %5, %6 : vector<1x4xf32>
    %cst_8 = arith.constant 3.000000e+00 : f32
    %8 = vector.broadcast %cst_8 : f32 to vector<1x4xf32>
    %9 = arith.addf %7, %8 : vector<1x4xf32>
    %cst_9 = arith.constant 0.000000e+00 : f32
    %cst_10 = arith.constant 6.000000e+00 : f32
    %10 = vector.broadcast %cst_9 : f32 to vector<1x4xf32>
    %11 = arith.maximumf %10, %9 : vector<1x4xf32>
    %12 = vector.broadcast %cst_10 : f32 to vector<1x4xf32>
    %13 = arith.minimumf %12, %11 : vector<1x4xf32>
    %cst_11 = arith.constant 0.166666672 : f32
    %14 = vector.broadcast %cst_11 : f32 to vector<1x4xf32>
    %15 = arith.mulf %13, %14 : vector<1x4xf32>
    %c0_12 = arith.constant 0 : index
    %c0_13 = arith.constant 0 : index
    %c0_14 = arith.constant 0 : index
    %16 = vector.load %arg1[%c0_12, %c0_13, %c0_14] : memref<1x4x256xf32, #tpu.memory_space<vmem>>, vector<1x4x256xf32>
    %17 = vector.shape_cast %15 : vector<1x4xf32> to vector<1x4x1xf32>
    %18 = vector.broadcast %17 : vector<1x4x1xf32> to vector<1x4x256xf32>
    %19 = arith.mulf %16, %18 : vector<1x4x256xf32>
    %c0_15 = arith.constant 0 : index
    %c0_16 = arith.constant 0 : index
    %c0_17 = arith.constant 0 : index
    %20 = vector.load %arg4[%c0_15, %c0_16, %c0_17] : memref<1x4x256xf32, #tpu.memory_space<vmem>>, vector<1x4x256xf32>
    tpu.vector_store %arg4[%c0_15, %c0_16, %c0_17], %19 {strides = array<i32>} : memref<1x4x256xf32, #tpu.memory_space<vmem>>, vector<1x4x256xf32>,
    return
  }
  func.func @transform_0(%arg0: i32) -> (i32, i32, i32) {
    %c0_i32 = arith.constant 0 : i32
    %c0_i32_0 = arith.constant 0 : i32
    %c0_i32_1 = arith.constant 0 : i32
    return %arg0, %c0_i32, %c0_i32_0 : i32, i32, i32
  }
  func.func @transform_1(%arg0: i32) -> (i32, i32) {
    %c0_i32 = arith.constant 0 : i32
    %c0_i32_0 = arith.constant 0 : i32
    %c0_i32_1 = arith.constant 0 : i32
    return %c0_i32, %c0_i32_0 : i32, i32
  }
  func.func @transform_2(%arg0: i32) -> (i32, i32) {
    %c0_i32 = arith.constant 0 : i32
    %c0_i32_0 = arith.constant 0 : i32
    %c0_i32_1 = arith.constant 0 : i32
    return %c0_i32, %c0_i32_0 : i32, i32
  }
  func.func @transform_3(%arg0: i32) -> (i32, i32, i32) {
    %c0_i32 = arith.constant 0 : i32
    %c0_i32_0 = arith.constant 0 : i32
    %c0_i32_1 = arith.constant 0 : i32
    return %arg0, %c0_i32, %c0_i32_0 : i32, i32, i32
  }
}

</mosaic_0001>

<bundles_post_ra>
// kernel: tpu_custom_call.1
= control target key start
LH: loop header
LB: loop body
LE: loop exit
PB: predicated region body
PF: predicated region fallthrough
CT: control target
= control target key end

     0   :  { %8 = vsyncpa [#allocation3], 0  ;;  %s865_s0 = inlined_call_operand.hbm [shape: f32[2,4,256], index: 0, kind: input, shape index: {}]   ;;  %s866_s1 = inlined_call_operand.hbm [shape: f32[4,4], index: 1, kind: input, shape index: {}]   ;;  %s867_s2 = inlined_call_operand.vmem [shape: f32[1,4], index: 2, kind: input, shape index: {}]   ;;  %s868_s3 = inlined_call_operand.hbm [shape: f32[2,4,256], index: 3, kind: output, shape index: {}]  }
   0x1   :  { %10 = vsyncpa [#allocation3 + $0x1], 0 }
   0x2   :  { %11 = vsyncpa [#allocation6], 0 }
   0x3   :  { %12 = vsyncpa [#allocation4], 0 }
   0x4   :  { %14 = vsyncpa [#allocation4 + $0x1], 0  ;;  %s657_s12 = smov 0   ;;  %s659_s13 = smov 0  }
   0x5   :  { %s661_s14 = smov 0   ;;  %s663_s15 = smov 0  }
   0x6 LB: > { %s678_s16 = sadd.s32 4294967295, %s629_s15   ;;  %s413_s17 = sadd.s32 4294967294, %s629_s15   ;;  %s629_s15 = sphi %s663_s15, %s892_s15   ;;  %s625_s14 = sphi %s661_s14, %s891_s14   ;;  %s621_s13 = sphi %s659_s13, %s890_s13   ;;  %s617_s12 = sphi %s657_s12, %s889_s12  }
   0x7   : > { %p40_p0 = scmp.ne.s32.totalorder %s621_s13, %s617_s12  ;;  %p869_p1 = scmp.eq.s32.totalorder %s678_s16, 0 }
   0x8   : > { %p112_p3 = scmp.eq.s32.totalorder %s413_s17, 1  ;;  %p414_p5 = scmp.ge.s32.totalorder %s629_s15, 1 }
   0x9   : > { %p687_p4 = por %p869_p1, %p40_p0  ;;  %p119_p7 = scmp.lt.s32.totalorder %s629_s15, 3 }
   0xa   : > { %p692_p6 = por %p112_p3, %p40_p0  ;;  %s631_s21 = smov [#allocation5]  }
   0xb   : > { %s872_s18 = scalar_select %p687_p4, 1, 0 }
   0xc   : > { %s873_s19 = scalar_select %p692_p6, 1, 0 }
   0xd   : > { %p697_p8 = pnand %p414_p5, %p119_p7  ;;  %s132_s22 = sshll.u32 %s631_s21, 4  ;;  %s133_s22 = int_to_ptr.vmem [resolvable:$true] %s132_s22 }
   0xe   : > { %s705_s23 = sadd.s32 1, %s629_s15   ;;  %s27_s27 = sadd.s32 1, %s625_s14 }
   0xf   : > { %s874_s20 = scalar_select %p697_p8, 1, 0 }
  0x10   : > { %p448_p10 = pneg %p697_p8  ;;  %s24_s25 = ssub.s32 %s629_s15, %s705_s23 }
  0x11   : > { %p715_p12 = scmp.eq.s32.totalorder %s24_s25, 0  ;;  %s501_s30 = scalar_lea.hbm %s866_s1, 64 }
  0x12   : > { %p709_p11 = pnand %p448_p10, %p869_p1  ;;  %p502_p0 = scmp.ne.s32.totalorder %s866_s1, %s501_s30 }
  0x13   : > { %s876_s26 = scalar_select %p715_p12, 1, 0 }
  0x14   : > { %p503_p3 = pneg %p709_p11  ;;  %p508_p10 = scmp.lt.u32.totalorder %s501_s30, %s866_s1 }
  0x16   : > { %p504_p5 = pnand %p503_p3, %p502_p0 }
  0x18   : > { %p505_p7 = pneg %p504_p5 }
  0x1a   : > { %p510_p9 = pnand %p508_p10, %p505_p7 }
  0x1c   : > { %513 = shalt.err (!%p510_p9)
}
  0x1d   : > { %s514_s8 = scalar_lea.vmem %s133_s22, 64  ;;  %p522_p6 = scmp.lt.s32.totalorder %s133_s22, %s133_s22 }
  0x1e   : > { %p515_p1 = scmp.ne.s32.totalorder %s133_s22, %s514_s8  ;;  %p523_p4 = scmp.lt.s32.totalorder %s514_s8, %s514_s8 }
  0x20   : > { %p517_p2 = pnand %p515_p1, %p503_p3  ;;  %p524_p8 = por %p523_p4, %p522_p6 }
  0x22   : > { %p518_p13 = pneg %p517_p2 }
  0x24   : > { %p525_p12 = pnand %p524_p8, %p518_p13 }
  0x26   : > { %528 = shalt.err (!%p525_p12)
}
  0x27   : > { %451 = dma.hbm_to_vmem [thread:$0]  (!%p709_p11), %s866_s1, 64, %s133_s22, [#allocation6]  }
  0x28   : > { %p877_p1 = scmp.ne.s32.totalorder %s876_s26, 0  ;;  %p35_p2 = scmp.eq.s32.totalorder %s629_s15, 0 }
  0x29   : > { %p878_p4 = scmp.ne.s32.totalorder %s625_s14, %s621_s13  ;;  %p879_p6 = scmp.eq.s32.totalorder %s678_s16, 1 }
  0x2a   : > { %s741_s11 = scalar_select %p877_p1, %s625_s14, %s27_s27  }
  0x2b   : > { %p749_p8 = por %p879_p6, %p878_p4  ;;  %p461_p9 = scmp.lt.s32.totalorder %s629_s15, 2 }
  0x2c   : > { %s146_s21 = sand.u32 1, %s625_s14   ;;  %p881_p12 = pmov %p878_p4 }
  0x2d   : > { %s417_s24 = sshll.u32 %s146_s21, 3  ;;  %s431_s25 = sshll.u32 %s629_s15, 7 }
  0x2e   : > { %p36_p13 = por %p35_p2, %p881_p12  ;;  %s762_s22 = scalar_lea.hbm %s865_s0, %s431_s25 }
  0x2f   : > { %s150_s26 = scalar_lea.vmem [#allocation2], %s417_s24  ;;  %s147_s4 = scalar_lea.sflag [#allocation3], %s146_s21 }
  0x30   : > { %s158_s27 = sshll.u32 %s150_s26, 4  ;;  %p764_p11 = pnand %p461_p9, %p36_p13  ;;  %s768_s27 = int_to_ptr.vmem [resolvable:$true] %s158_s27 }
  0x31   : > { %s529_s5 = scalar_lea.hbm %s762_s22, 128  ;;  %s534_s8 = scalar_lea.hbm %s865_s0, 256 }
  0x32   : > { %p530_p0 = scmp.ne.s32.totalorder %s762_s22, %s529_s5  ;;  %p531_p3 = pneg %p764_p11 }
  0x33   : > { %p535_p10 = scmp.lt.u32.totalorder %s762_s22, %s865_s0  ;;  %p536_p1 = scmp.lt.u32.totalorder %s534_s8, %s529_s5 }
  0x34   : > { %p532_p5 = pnand %p531_p3, %p530_p0  ;;  %p538_p4 = scmp.lt.u32.totalorder %s529_s5, %s762_s22 }
  0x35   : > { %p537_p2 = por %p536_p1, %p535_p10 }
  0x36   : > { %p533_p7 = pneg %p532_p5 }
  0x37   : > { %p539_p6 = por %p538_p4, %p537_p2 }
  0x39   : > { %p540_p9 = pnand %p539_p6, %p533_p7 }
  0x3b   : > { %543 = shalt.err (!%p540_p9)
}
  0x3c   : > { %s544_s21 = scalar_lea.vmem %s768_s27, 128  ;;  %s632_s24 = smov [#allocation2]  }
  0x3d   : > { %p545_p12 = scmp.ne.s32.totalorder %s768_s27, %s544_s21  ;;  %s549_s25 = sshll.u32 %s632_s24, 4  ;;  %s550_s25 = int_to_ptr.vmem [resolvable:$false] %s549_s25 }
  0x3e   : > { %s551_s28 = scalar_lea.vmem %s550_s25, 256  ;;  %p552_p5 = scmp.lt.s32.totalorder %s768_s27, %s550_s25 }
  0x3f   : > { %p547_p13 = pnand %p545_p12, %p531_p3  ;;  %p553_p10 = scmp.lt.s32.totalorder %s551_s28, %s544_s21 }
  0x41   : > { %p548_p0 = pneg %p547_p13  ;;  %p554_p1 = por %p553_p10, %p552_p5 }
  0x43   : > { %p555_p2 = pnand %p554_p1, %p548_p0 }
  0x45   : > { %558 = shalt.err (!%p555_p2)
}
  0x46   : > { %455 = dma.hbm_to_vmem [thread:$0]  (!%p764_p11), %s762_s22, 128, %s768_s27, %s147_s4  }
  0x47   : > { %p883_p7 = scmp.ne.s32.totalorder %s874_s20, 0 }
  0x48   : > { %s798_s29 = sand.u32 (!%p883_p7), 1, %s621_s13   ;;  %p884_p3 = scmp.ne.s32.totalorder (!%p883_p7), %s872_s18, 0 }
  0x49   : > { %167 = sbr.rel (%p883_p7) target bundleno = 593 (0x251), region = 32  ;;  %s421_s26 = sshll.u32 (!%p883_p7), %s798_s29, 3 }
  0x4a   : > { %s170_s5 = scalar_lea.sflag (!%p883_p7), [#allocation3], %s798_s29  ;;  %s173_s6 = scalar_lea.vmem (!%p883_p7), [#allocation2], %s421_s26 }
  0x50   : > { %604 = dma.done.wait (%p884_p3), %s170_s5, 128  }
  0x51   : > { %606 = vsyncadd (%p884_p3), %s170_s5, 4294967168  ;;  %p885_p11 = scmp.eq.s32.totalorder %s678_s16, 0 }
  0x53   : > { %608 = dma.done.wait (%p885_p11), [#allocation6], 64   ;;  %p886_p4 = pmov %p885_p11 }
  0x54   : > { %vm204_vm0 = vcmask 1043456   ;;  %v200_v0 = vld [vmem:[%s173_s6] sm:$0xff]  ;;  %v633_v5 = vmov 0.0   ;;  %v211_v6 = vld [vmem:[#allocation5] sm:$0xf]  ;;  %vm634_vm1 = vmmov 0   ;;  %v214_v7 = vlaneseq }
  0x55   : > { %610 = vsyncadd (%p886_p4), [#allocation6], 4294967232  ;;  %v202_v1 = vcombine.high %v200_v0, %v200_v0  ;;  %v205_v2 = vsel %vm204_vm0, %v200_v0, 0.0  ;;  %435 = vmatprep.subr.mxu0 %v633_v5  ;;  %437 = vmatprep.mubr.msk.f32.mxu0 %vm634_vm1, %v633_v5  ;;  %vm220_vm2 = vcmask 31744   ;;  %v212_v14 = vld [vmem:[%s867_s2] sm:$0x1] }
  0x56   : > { %436 = vmatpush3.msk.msra.mxu0 %vm204_vm0, %v211_v6  ;;  %v215_v8 = vand.u32 127, %v214_v7  ;;  %v217_v9 = vshrl.u32 %v214_v7, 7  ;;  %v635_v24 = vmov 839922192   ;;  %s432_s22 = sshll.u32 %s678_s16, 7  ;;  %s199_s27 = scalar_lea.vmem [#allocation7], %s421_s26 }
  0x57   : > { %v206_v3 = vsel %vm204_vm0, %v202_v1, 0.0  ;;  %v309_v25 = vunpack.c.l.s4 %v635_v24  ;;  %s333_s30 = sshll.u32 %s199_s27, 4  ;;  %s821_s8 = scalar_lea.hbm %s868_s3, %s432_s22  ;;  %s823_s30 = int_to_ptr.vmem [resolvable:$true] %s333_s30 }
  0x58   : > { %v207_v4 = vadd.f32 %v206_v3, %v205_v2  ;;  %v218_v10 = vsub.s32 %v215_v8, %v217_v9  ;;  %v302_v21 = vsub.s32 0, %v217_v9  ;;  %s319_s9 = scalar_lea.sflag [#allocation4], %s798_s29  ;;  %s559_s10 = scalar_lea.vmem %s823_s30, 128 }
  0x59   : > { %v310_v26 = vunpack.c.0.s8 %v309_v25  ;;  %p560_p6 = scmp.ne.s32.totalorder %s823_s30, %s559_s10  ;;  %s636_s16 = smov [#allocation7]  }
  0x5a   : > { %208 = vadd.xlane.f32.xlu0 %v207_v4  ;;  %s563_s21 = sshll.u32 %s636_s16, 4  ;;  %s564_s21 = int_to_ptr.vmem [resolvable:$false] %s563_s21 }
  0x5b   : > { %v313_v27 = vsub.s32 %v310_v26, %v217_v9  ;;  %p561_p9 = pnand %p560_p6, %p749_p8  ;;  %s565_s24 = scalar_lea.vmem %s564_s21, 256 }
  0x5c   : > { %p566_p13 = scmp.lt.s32.totalorder %s823_s30, %s564_s21  ;;  %p567_p0 = scmp.lt.s32.totalorder %s565_s24, %s559_s10 }
  0x5d   : > { %p562_p12 = pneg %p561_p9 }
  0x5e   : > { %p568_p5 = por %p567_p0, %p566_p13 }
  0x60   : > { %p569_p10 = pnand %p568_p5, %p562_p12 }
  0xe7   : > { %v209_v11 = vpop.xlane.xlu0 %208 }
  0xe8   : > { %v210_v12 = vmul.f32 0.00390625, %v209_v11 }
  0xea   : > { %v219_v13 = vrot.slane %v210_v12, %v218_v10 }
  0xec   : > { %438 = vmatmul.mubr.msk.f32.vlgmr.msra.gmra.mrb[0].mxu0 %vm220_vm2, %v219_v13 }
 0x1bf   : > { %v292_v15 = vpop.f32.mrb[0].mxu0 }
 0x1c0   : > { %v293_v16 = vadd.f32 %v292_v15, %v212_v14  ;;  %v439_v17 = vpop.f32.mrb[1].mxu0 }
 0x1c2   : > { %v296_v18 = vadd.f32 3.0, %v293_v16 }
 0x1c4   : > { %v297_v19 = vmax.f32 %v296_v18, 0.0 }
 0x1c6   : > { %v298_v20 = vmin.f32 %v297_v19, 6.0 }
 0x1c8   : > { %v299_v22 = vmul.f32 0.16666667, %v298_v20 }
 0x1ca   : > { %v303_v23 = vrot.slane %v299_v22, %v302_v21 }
 0x1cc   : > { %305 = vbcast.lane.b32.xlu0 %v303_v23, 256 }
 0x23e   : > { %v306_v28 = vpop.permute.xlu0 %305 }
 0x23f   : > { %v314_v29 = vrot.slane %v306_v28, %v313_v27 }
 0x241   : > { %v316_v30 = vmul.f32 %v314_v29, %v200_v0 }
 0x243   : > { %317 = vst [vmem:[%s199_s27] sm:$0xff] %v316_v30 }
 0x244   : > { %572 = shalt.err (!%p569_p10)
}
 0x245   : > { %s573_s25 = scalar_lea.hbm %s821_s8, 128  ;;  %s577_s26 = scalar_lea.hbm %s868_s3, 256 }
 0x246   : > { %p574_p1 = scmp.ne.s32.totalorder %s821_s8, %s573_s25  ;;  %p578_p3 = scmp.lt.u32.totalorder %s821_s8, %s868_s3 }
 0x247   : > { %p579_p11 = scmp.lt.u32.totalorder %s577_s26, %s573_s25  ;;  %p581_p6 = scmp.lt.u32.totalorder %s573_s25, %s821_s8 }
 0x248   : > { %p575_p2 = pnand %p574_p1, %p749_p8 }
 0x249   : > { %p580_p4 = por %p579_p11, %p578_p3 }
 0x24a   : > { %p576_p7 = pneg %p575_p2 }
 0x24b   : > { %p582_p9 = por %p581_p6, %p580_p4 }
 0x24d   : > { %p583_p12 = pnand %p582_p9, %p576_p7 }
 0x24f   : > { %586 = shalt.err (!%p583_p12)
}
 0x250   : > { %446 = dma.vmem_to_hbm [thread:$0]  (%p749_p8), %s823_s30, 128, %s821_s8, %s319_s9  }
 0x251 PF: > { %s345_s18 = sand.u32 1, %s617_s12   ;;  %p887_p13 = scmp.ne.s32.totalorder %s873_s19, 0 }
 0x252   : > { %p888_p0 = scmp.ge.s32.totalorder %s629_s15, 2  ;;  %s346_s20 = scalar_lea.sflag [#allocation4], %s345_s18 }
 0x254   : > { %p457_p5 = pnand %p888_p0, %p887_p13 }
 0x256   : > { %612 = dma.done.wait (!%p457_p5), %s346_s20, 128  }
 0x257   : > { %614 = vsyncadd (!%p457_p5), %s346_s20, 4294967168  ;;  %p17_p10 = scmp.ge.s32.totalorder %s705_s23, 4   ;;  %s889_s12 = smov %s621_s13 }
 0x258   : > { %s890_s13 = smov %s625_s14  ;;  %s891_s14 = smov %s741_s11 }
 0x259   : > { %s892_s15 = smov %s705_s23  ;;  %19 = sbr.rel (!%p17_p10) target bundleno = 6 (0x6), region = 81 }
 0x260   :  { %351 = vsyncpa [#allocation3], 1 }
 0x261   :  { %353 = vsyncpa [#allocation3 + $0x1], 1 }
 0x262   :  { %354 = vsyncpa [#allocation6], 1 }
 0x263   :  { %355 = vsyncpa [#allocation4], 1 }
 0x264   :  { %357 = vsyncpa [#allocation4 + $0x1], 1 }

</bundles_post_ra>
